<compile_context>
chip_gen: v7x
topology: tpu7x:2x2x1
jax: 0.10.0
libtpu: 0.0.40
codegen_flags: <defaults>
</compile_context>

<pallas_src>
import math

import jax
import jax.numpy as jnp
from jax.experimental import pallas as pl
from jax.experimental.pallas import tpu as pltpu

# ---------------- model dimensions (small, consistent with the module) ------
VOCAB = 50
EMBED_DIM = 32          # D
NUM_CLASS = 4
CO = 100                # out channels per conv
KS = (3, 4, 5)          # kernel heights
BATCH = 2
SEQ = 16                # L  (must be >= max(KS))

# padded (lane-dense) sizes used inside the kernel
CO_PAD = 128
CLS_PAD = 128


# ------------------------------ kernel --------------------------------------
def textcls_kernel(u3_ref, u4_ref, u5_ref,
                   w3_ref, b3_ref, w4_ref, b4_ref, w5_ref, b5_ref,
                   wfc_ref, bfc_ref, out_ref):
    """One batch element: 3 x (im2col matmul + bias + ReLU + max-pool), then fc."""
    pooled = []
    for u_ref, w_ref, b_ref in ((u3_ref, w3_ref, b3_ref),
                                (u4_ref, w4_ref, b4_ref),
                                (u5_ref, w5_ref, b5_ref)):
        u = u_ref[0]                                        # (Lk, K*D) bf16
        conv = jnp.dot(u, w_ref[...],                       # one MXU pass per conv
                       preferred_element_type=jnp.float32)  # (Lk, CO_PAD) f32
        conv = jnp.maximum(conv + b_ref[...], 0.0)          # bias + ReLU
        pooled.append(jnp.max(conv, axis=0, keepdims=True))  # (1, CO_PAD)

    # Pooled blocks are each 128 lanes wide -> concat is 128-aligned (free).
    feat = jnp.concatenate(pooled, axis=-1)                 # (1, 3*CO_PAD) f32
    logits = jnp.dot(feat.astype(jnp.bfloat16), wfc_ref[...],
                     preferred_element_type=jnp.float32)    # (1, CLS_PAD)
    logits = logits + bfc_ref[...]

    # TODO(synk): nn.Dropout is identity in eval mode; training-mode dropout
    # and the mixup_data path (which needs labels y) are not implemented.
    out_ref[0] = logits                                     # lane-dense (1,128) store


# ------------------------------ wrapper --------------------------------------
def _im2col(x, K):
    """(B, L, D) -> (B, L-K+1, K*D); column k*D+d = x[:, t+k, d]."""
    L = x.shape[1]
    Lk = L - K + 1
    return jnp.concatenate([x[:, k:k + Lk, :] for k in range(K)], axis=-1)


def _prepare_params(params):
    """Pad / reshape / cast weights for lane-dense kernel layout."""
    prep = {}
    for K in KS:
        w = params[f"w{K}"].reshape(K * EMBED_DIM, CO)               # (K*D, Co)
        prep[f"w{K}"] = (jnp.zeros((K * EMBED_DIM, CO_PAD), jnp.float32)
                         .at[:, :CO].set(w).astype(jnp.bfloat16))
        prep[f"b{K}"] = (jnp.zeros((1, CO_PAD), jnp.float32)
                         .at[:, :CO].set(params[f"b{K}"]))
    wfc = params["wfc"].reshape(len(KS), CO, NUM_CLASS)
    wfc_pad = (jnp.zeros((len(KS), CO_PAD, CLS_PAD), jnp.float32)
               .at[:, :CO, :NUM_CLASS].set(wfc))
    prep["wfc"] = wfc_pad.reshape(len(KS) * CO_PAD, CLS_PAD).astype(jnp.bfloat16)
    prep["bfc"] = (jnp.zeros((1, CLS_PAD), jnp.float32)
                   .at[:, :NUM_CLASS].set(params["bfc"]))
    return prep


@jax.jit
def textcls_forward(input_ids, params):
    prep = _prepare_params(params)
    x = params["embedding"][input_ids].astype(jnp.bfloat16)         # (B, L, D)
    B, L, D = x.shape

    unfolded = [_im2col(x, K) for K in KS]                           # (B, Lk, K*D) bf16
    args = tuple(unfolded) + (prep["w3"], prep["b3"],
                              prep["w4"], prep["b4"],
                              prep["w5"], prep["b5"],
                              prep["wfc"], prep["bfc"])

    in_specs = [pl.BlockSpec((1,) + u.shape[1:], lambda b: (b, 0, 0))
                for u in unfolded]
    in_specs += [pl.BlockSpec(a.shape, lambda b: (0, 0)) for a in args[3:]]

    flops = 2 * B * sum((L - K + 1) * (K * D) * CO_PAD for K in KS)
    flops += 2 * B * (len(KS) * CO_PAD) * CLS_PAD
    bytes_accessed = sum(a.size * a.dtype.itemsize for a in args) + B * CLS_PAD * 4

    out = pl.pallas_call(
        textcls_kernel,
        out_shape=jax.ShapeDtypeStruct((B, 1, CLS_PAD), jnp.float32),
        grid_spec=pltpu.PrefetchScalarGridSpec(
            num_scalar_prefetch=0,
            grid=(B,),
            in_specs=in_specs,
            out_specs=pl.BlockSpec((1, 1, CLS_PAD), lambda b: (b, 0, 0)),
        ),
        compiler_params=pltpu.CompilerParams(
            dimension_semantics=("parallel",)),
        cost_estimate=pl.CostEstimate(flops=flops, transcendentals=0,
                                      bytes_accessed=bytes_accessed),
    )(*args)
    return out[:, 0, :NUM_CLASS]                                     # (B, num_class)


# ------------------------------ params / reference ---------------------------
def init_params(key):
    """Deterministic synthetic parameters matching the module's shapes."""
    keys = jax.random.split(key, 9)
    initrange = 0.5
    params = {
        # nn.Embedding(vocab, D): uniform(-0.5, 0.5) as in init_weights()
        "embedding": jax.random.uniform(keys[0], (VOCAB, EMBED_DIM),
                                        jnp.float32, -initrange, initrange),
        # nn.Linear(3*Co, num_class): weight uniform(-0.5, 0.5), bias zero.
        # PyTorch Linear weight is (out, in); we store the transposed (in, out).
        "wfc": jax.random.uniform(keys[1], (len(KS) * CO, NUM_CLASS),
                                  jnp.float32, -initrange, initrange),
        "bfc": jnp.zeros((1, NUM_CLASS), jnp.float32),
    }
    # nn.Conv2d(1, Co, (K, D)): PyTorch weight shape (Co, 1, K, D); stored as
    # (K, D, Co) so row k*D+d of the reshaped (K*D, Co) matrix is tap k, dim d.
    for i, K in enumerate(KS):
        fan_in = K * EMBED_DIM
        bound = 1.0 / math.sqrt(fan_in)
        params[f"w{K}"] = jax.random.uniform(keys[2 + 2 * i], (K, EMBED_DIM, CO),
                                             jnp.float32, -bound, bound)
        params[f"b{K}"] = jax.random.uniform(keys[3 + 2 * i], (1, CO),
                                             jnp.float32, -bound, bound)
    return params


def reference_forward(input_ids, params):
    """Plain-JAX reference with the same bf16 input/weight quantization."""
    x = params["embedding"][input_ids].astype(jnp.bfloat16)         # (B, L, D)
    B, L, D = x.shape
    feats = []
    for K in KS:
        unf = _im2col(x, K)                                          # (B, Lk, K*D)
        w = params[f"w{K}"].reshape(K * D, CO).astype(jnp.bfloat16)
        conv = jax.lax.dot_general(unf, w, (((2,), (0,)), ((), ())),
                                   preferred_element_type=jnp.float32)
        conv = jnp.maximum(conv + params[f"b{K}"], 0.0)              # (B, Lk, Co)
        feats.append(jnp.max(conv, axis=1))                          # (B, Co)
    f = jnp.concatenate(feats, axis=1).astype(jnp.bfloat16)          # (B, 3*Co)
    return jnp.dot(f, params["wfc"].astype(jnp.bfloat16),
                   preferred_element_type=jnp.float32) + params["bfc"]


if __name__ == "__main__":
    key = jax.random.PRNGKey(0)
    k_param, k_ids = jax.random.split(key)
    params = init_params(k_param)
    input_ids = jax.random.randint(k_ids, (BATCH, SEQ), 0, VOCAB, dtype=jnp.int32)

    logits = jax.block_until_ready(textcls_forward(input_ids, params))
    ref = jax.block_until_ready(reference_forward(input_ids, params))

    assert logits.shape == (BATCH, NUM_CLASS)
    assert jnp.allclose(logits, ref, atol=1e-2, rtol=1e-2), (
        f"mismatch:\n{logits}\nvs\n{ref}")

    print("KERNEL_OK")
</pallas_src>

<mosaic_0001>
module attributes {stable_mosaic.version = 11 : i64} {
  func.func @textcls_kernel(%arg0: i32, %arg1: memref<1x14x96xbf16, #tpu.memory_space<vmem>>, %arg2: memref<1x13x128xbf16, #tpu.memory_space<vmem>>, %arg3: memref<1x12x160xbf16, #tpu.memory_space<vmem>>, %arg4: memref<96x128xbf16, #tpu.memory_space<vmem>>, %arg5: memref<1x128xf32, #tpu.memory_space<vmem>>, %arg6: memref<128x128xbf16, #tpu.memory_space<vmem>>, %arg7: memref<1x128xf32, #tpu.memory_space<vmem>>, %arg8: memref<160x128xbf16, #tpu.memory_space<vmem>>, %arg9: memref<1x128xf32, #tpu.memory_space<vmem>>, %arg10: memref<384x128xbf16, #tpu.memory_space<vmem>>, %arg11: memref<1x128xf32, #tpu.memory_space<vmem>>, %arg12: memref<1x1x128xf32, #tpu.memory_space<vmem>>) attributes {dimension_semantics = [#tpu.dimension_semantics<parallel>], iteration_bounds = array<i64: 2>, scalar_prefetch = 0 : i64, scratch_operands = 0 : i64, tpu.core_type = #tpu.core_type<tc>, window_params = [{transform_indices = @transform_0, window_bounds = array<i64: 1, 14, 96>}, {transform_indices = @transform_1, window_bounds = array<i64: 1, 13, 128>}, {transform_indices = @transform_2, window_bounds = array<i64: 1, 12, 160>}, {pipeline_mode = #tpu.pipeline_mode<synchronous>, transform_indices = @transform_3, window_bounds = array<i64: 96, 128>}, {pipeline_mode = #tpu.pipeline_mode<synchronous>, transform_indices = @transform_4, window_bounds = array<i64: 1, 128>}, {pipeline_mode = #tpu.pipeline_mode<synchronous>, transform_indices = @transform_5, window_bounds = array<i64: 128, 128>}, {pipeline_mode = #tpu.pipeline_mode<synchronous>, transform_indices = @transform_6, window_bounds = array<i64: 1, 128>}, {pipeline_mode = #tpu.pipeline_mode<synchronous>, transform_indices = @transform_7, window_bounds = array<i64: 160, 128>}, {pipeline_mode = #tpu.pipeline_mode<synchronous>, transform_indices = @transform_8, window_bounds = array<i64: 1, 128>}, {pipeline_mode = #tpu.pipeline_mode<synchronous>, transform_indices = @transform_9, window_bounds = array<i64: 384, 128>}, {pipeline_mode = #tpu.pipeline_mode<synchronous>, transform_indices = @transform_10, window_bounds = array<i64: 1, 128>}, {transform_indices = @transform_11, window_bounds = array<i64: 1, 1, 128>}]} {
    %c0 = arith.constant 0 : index
    %c0_0 = arith.constant 0 : index
    %c0_1 = arith.constant 0 : index
    %0 = vector.load %arg1[%c0, %c0_0, %c0_1] : memref<1x14x96xbf16, #tpu.memory_space<vmem>>, vector<1x14x96xbf16>
    %1 = vector.shape_cast %0 : vector<1x14x96xbf16> to vector<14x96xbf16>
    %c0_2 = arith.constant 0 : index
    %c0_3 = arith.constant 0 : index
    %2 = vector.load %arg4[%c0_2, %c0_3] : memref<96x128xbf16, #tpu.memory_space<vmem>>, vector<96x128xbf16>
    %cst = arith.constant dense<0.000000e+00> : vector<14x128xf32>
    %3 = tpu.matmul %1, %2, %cst {dimension_numbers = #tpu.dot_dimension_numbers<[1], [0], [0], [1], [0, 0, 1, 1], [], []>} : vector<14x96xbf16>, vector<96x128xbf16>, vector<14x128xf32> -> vector<14x128xf32>
    %c0_4 = arith.constant 0 : index
    %c0_5 = arith.constant 0 : index
    %4 = vector.load %arg5[%c0_4, %c0_5] : memref<1x128xf32, #tpu.memory_space<vmem>>, vector<1x128xf32>
    %5 = vector.broadcast %4 : vector<1x128xf32> to vector<14x128xf32>
    %6 = arith.addf %3, %5 : vector<14x128xf32>
    %cst_6 = arith.constant 0.000000e+00 : f32
    %7 = vector.broadcast %cst_6 : f32 to vector<14x128xf32>
    %8 = arith.maximumf %6, %7 : vector<14x128xf32>
    %cst_7 = arith.constant dense<0xFF800000> : vector<128xf32>
    %9 = vector.multi_reduction <maximumf>, %8, %cst_7 [0] : vector<14x128xf32> to vector<128xf32>
    %10 = vector.shape_cast %9 : vector<128xf32> to vector<1x128xf32>
    %c0_8 = arith.constant 0 : index
    %c0_9 = arith.constant 0 : index
    %c0_10 = arith.constant 0 : index
    %11 = vector.load %arg2[%c0_8, %c0_9, %c0_10] : memref<1x13x128xbf16, #tpu.memory_space<vmem>>, vector<1x13x128xbf16>
    %12 = vector.shape_cast %11 : vector<1x13x128xbf16> to vector<13x128xbf16>
    %c0_11 = arith.constant 0 : index
    %c0_12 = arith.constant 0 : index
    %13 = vector.load %arg6[%c0_11, %c0_12] : memref<128x128xbf16, #tpu.memory_space<vmem>>, vector<128x128xbf16>
    %cst_13 = arith.constant dense<0.000000e+00> : vector<13x128xf32>
    %14 = tpu.matmul %12, %13, %cst_13 {dimension_numbers = #tpu.dot_dimension_numbers<[1], [0], [0], [1], [0, 0, 1, 1], [], []>} : vector<13x128xbf16>, vector<128x128xbf16>, vector<13x128xf32> -> vector<13x128xf32>
    %c0_14 = arith.constant 0 : index
    %c0_15 = arith.constant 0 : index
    %15 = vector.load %arg7[%c0_14, %c0_15] : memref<1x128xf32, #tpu.memory_space<vmem>>, vector<1x128xf32>
    %16 = vector.broadcast %15 : vector<1x128xf32> to vector<13x128xf32>
    %17 = arith.addf %14, %16 : vector<13x128xf32>
    %cst_16 = arith.constant 0.000000e+00 : f32
    %18 = vector.broadcast %cst_16 : f32 to vector<13x128xf32>
    %19 = arith.maximumf %17, %18 : vector<13x128xf32>
    %cst_17 = arith.constant dense<0xFF800000> : vector<128xf32>
    %20 = vector.multi_reduction <maximumf>, %19, %cst_17 [0] : vector<13x128xf32> to vector<128xf32>
    %21 = vector.shape_cast %20 : vector<128xf32> to vector<1x128xf32>
    %c0_18 = arith.constant 0 : index
    %c0_19 = arith.constant 0 : index
    %c0_20 = arith.constant 0 : index
    %22 = vector.load %arg3[%c0_18, %c0_19, %c0_20] : memref<1x12x160xbf16, #tpu.memory_space<vmem>>, vector<1x12x160xbf16>
    %23 = vector.shape_cast %22 : vector<1x12x160xbf16> to vector<12x160xbf16>
    %c0_21 = arith.constant 0 : index
    %c0_22 = arith.constant 0 : index
    %24 = vector.load %arg8[%c0_21, %c0_22] : memref<160x128xbf16, #tpu.memory_space<vmem>>, vector<160x128xbf16>
    %cst_23 = arith.constant dense<0.000000e+00> : vector<12x128xf32>
    %25 = tpu.matmul %23, %24, %cst_23 {dimension_numbers = #tpu.dot_dimension_numbers<[1], [0], [0], [1], [0, 0, 1, 1], [], []>} : vector<12x160xbf16>, vector<160x128xbf16>, vector<12x128xf32> -> vector<12x128xf32>
    %c0_24 = arith.constant 0 : index
    %c0_25 = arith.constant 0 : index
    %26 = vector.load %arg9[%c0_24, %c0_25] : memref<1x128xf32, #tpu.memory_space<vmem>>, vector<1x128xf32>
    %27 = vector.broadcast %26 : vector<1x128xf32> to vector<12x128xf32>
    %28 = arith.addf %25, %27 : vector<12x128xf32>
    %cst_26 = arith.constant 0.000000e+00 : f32
    %29 = vector.broadcast %cst_26 : f32 to vector<12x128xf32>
    %30 = arith.maximumf %28, %29 : vector<12x128xf32>
    %cst_27 = arith.constant dense<0xFF800000> : vector<128xf32>
    %31 = vector.multi_reduction <maximumf>, %30, %cst_27 [0] : vector<12x128xf32> to vector<128xf32>
    %32 = vector.shape_cast %31 : vector<128xf32> to vector<1x128xf32>
    %33 = tpu.concatenate %10, %21, %32 in 1 : vector<1x128xf32>, vector<1x128xf32>, vector<1x128xf32> -> vector<1x384xf32>
    %34 = arith.truncf %33 : vector<1x384xf32> to vector<1x384xbf16>
    %c0_28 = arith.constant 0 : index
    %c0_29 = arith.constant 0 : index
    %35 = vector.load %arg10[%c0_28, %c0_29] : memref<384x128xbf16, #tpu.memory_space<vmem>>, vector<384x128xbf16>
    %cst_30 = arith.constant dense<0.000000e+00> : vector<1x128xf32>
    %36 = tpu.matmul %34, %35, %cst_30 {dimension_numbers = #tpu.dot_dimension_numbers<[1], [0], [0], [1], [0, 0, 1, 1], [], []>} : vector<1x384xbf16>, vector<384x128xbf16>, vector<1x128xf32> -> vector<1x128xf32>
    %c0_31 = arith.constant 0 : index
    %c0_32 = arith.constant 0 : index
    %37 = vector.load %arg11[%c0_31, %c0_32] : memref<1x128xf32, #tpu.memory_space<vmem>>, vector<1x128xf32>
    %38 = arith.addf %36, %37 : vector<1x128xf32>
    %c0_33 = arith.constant 0 : index
    %c0_34 = arith.constant 0 : index
    %c0_35 = arith.constant 0 : index
    %39 = vector.load %arg12[%c0_33, %c0_34, %c0_35] : memref<1x1x128xf32, #tpu.memory_space<vmem>>, vector<1x1x128xf32>
    %40 = vector.shape_cast %39 : vector<1x1x128xf32> to vector<1x128xf32>
    %41 = vector.shape_cast %38 : vector<1x128xf32> to vector<1x1x128xf32>
    tpu.vector_store %arg12[%c0_33, %c0_34, %c0_35], %41 {strides = array<i32>} : memref<1x1x128xf32, #tpu.memory_space<vmem>>, vector<1x1x128xf32>,
    return
  }
  func.func @transform_0(%arg0: i32) -> (i32, i32, i32) {
    %c0_i32 = arith.constant 0 : i32
    %c0_i32_0 = arith.constant 0 : i32
    %c0_i32_1 = arith.constant 0 : i32
    return %arg0, %c0_i32, %c0_i32_0 : i32, i32, i32
  }
  func.func @transform_1(%arg0: i32) -> (i32, i32, i32) {
    %c0_i32 = arith.constant 0 : i32
    %c0_i32_0 = arith.constant 0 : i32
    %c0_i32_1 = arith.constant 0 : i32
    return %arg0, %c0_i32, %c0_i32_0 : i32, i32, i32
  }
  func.func @transform_2(%arg0: i32) -> (i32, i32, i32) {
    %c0_i32 = arith.constant 0 : i32
    %c0_i32_0 = arith.constant 0 : i32
    %c0_i32_1 = arith.constant 0 : i32
    return %arg0, %c0_i32, %c0_i32_0 : i32, i32, i32
  }
  func.func @transform_3(%arg0: i32) -> (i32, i32) {
    %c0_i32 = arith.constant 0 : i32
    %c0_i32_0 = arith.constant 0 : i32
    %c0_i32_1 = arith.constant 0 : i32
    return %c0_i32, %c0_i32_0 : i32, i32
  }
  func.func @transform_4(%arg0: i32) -> (i32, i32) {
    %c0_i32 = arith.constant 0 : i32
    %c0_i32_0 = arith.constant 0 : i32
    %c0_i32_1 = arith.constant 0 : i32
    return %c0_i32, %c0_i32_0 : i32, i32
  }
  func.func @transform_5(%arg0: i32) -> (i32, i32) {
    %c0_i32 = arith.constant 0 : i32
    %c0_i32_0 = arith.constant 0 : i32
    %c0_i32_1 = arith.constant 0 : i32
    return %c0_i32, %c0_i32_0 : i32, i32
  }
  func.func @transform_6(%arg0: i32) -> (i32, i32) {
    %c0_i32 = arith.constant 0 : i32
    %c0_i32_0 = arith.constant 0 : i32
    %c0_i32_1 = arith.constant 0 : i32
    return %c0_i32, %c0_i32_0 : i32, i32
  }
  func.func @transform_7(%arg0: i32) -> (i32, i32) {
    %c0_i32 = arith.constant 0 : i32
    %c0_i32_0 = arith.constant 0 : i32
    %c0_i32_1 = arith.constant 0 : i32
    return %c0_i32, %c0_i32_0 : i32, i32
  }
  func.func @transform_8(%arg0: i32) -> (i32, i32) {
    %c0_i32 = arith.constant 0 : i32
    %c0_i32_0 = arith.constant 0 : i32
    %c0_i32_1 = arith.constant 0 : i32
    return %c0_i32, %c0_i32_0 : i32, i32
  }
  func.func @transform_9(%arg0: i32) -> (i32, i32) {
    %c0_i32 = arith.constant 0 : i32
    %c0_i32_0 = arith.constant 0 : i32
    %c0_i32_1 = arith.constant 0 : i32
    return %c0_i32, %c0_i32_0 : i32, i32
  }
  func.func @transform_10(%arg0: i32) -> (i32, i32) {
    %c0_i32 = arith.constant 0 : i32
    %c0_i32_0 = arith.constant 0 : i32
    %c0_i32_1 = arith.constant 0 : i32
    return %c0_i32, %c0_i32_0 : i32, i32
  }
  func.func @transform_11(%arg0: i32) -> (i32, i32, i32) {
    %c0_i32 = arith.constant 0 : i32
    %c0_i32_0 = arith.constant 0 : i32
    %c0_i32_1 = arith.constant 0 : i32
    return %arg0, %c0_i32, %c0_i32_0 : i32, i32, i32
  }
}

</mosaic_0001>

<bundles_post_ra>
// kernel: textcls_forward.1
= control target key start
LH: loop header
LB: loop body
LE: loop exit
PB: predicated region body
PF: predicated region fallthrough
CT: control target
= control target key end

     0   :  { %16 = vsyncpa [#allocation3], 0  ;;  %s1911_s0 = inlined_call_operand.vmem [shape: bf16[2,14,96], index: 0, kind: input, shape index: {}]   ;;  %s1912_s1 = inlined_call_operand.vmem [shape: bf16[2,13,128], index: 1, kind: input, shape index: {}]   ;;  %s1913_s2 = inlined_call_operand.vmem [shape: bf16[2,12,160], index: 2, kind: input, shape index: {}]   ;;  %s1914_s3 = inlined_call_operand.vmem [shape: bf16[96,128], index: 3, kind: input, shape index: {}]   ;;  %s1915_s4 = inlined_call_operand.vmem [shape: f32[1,128], index: 4, kind: input, shape index: {}]   ;;  %s1916_s5 = inlined_call_operand.vmem [shape: bf16[128,128], index: 5, kind: input, shape index: {}]   ;;  %s1917_s6 = inlined_call_operand.vmem [shape: f32[1,128], index: 6, kind: input, shape index: {}]   ;;  %s1918_s7 = inlined_call_operand.vmem [shape: bf16[160,128], index: 7, kind: input, shape index: {}]   ;;  %s1919_s8 = inlined_call_operand.vmem [shape: f32[1,128], index: 8, kind: input, shape index: {}]   ;;  %s1920_s9 = inlined_call_operand.vmem [shape: bf16[384,128], index: 9, kind: input, shape index: {}]   ;;  %s1921_s10 = inlined_call_operand.vmem [shape: f32[1,128], index: 10, kind: input, shape index: {}]   ;;  %s1922_s11 = inlined_call_operand.hbm [shape: f32[2,1,128], index: 11, kind: output, shape index: {}]  }
   0x1   :  { %18 = vsyncpa [#allocation3 + $0x1], 0  ;;  %s1596_s17 = smov 0   ;;  %s1598_s18 = smov 0  }
   0x2   :  { %s1600_s19 = smov 0   ;;  %s1602_s20 = smov 0  }
   0x3 LB: > { %s1617_s21 = sadd.s32 4294967295, %s1530_s20   ;;  %s1197_s22 = sadd.s32 4294967294, %s1530_s20   ;;  %s1530_s20 = sphi %s1602_s20, %s1932_s20   ;;  %s1526_s19 = sphi %s1600_s19, %s1931_s19   ;;  %s1522_s18 = sphi %s1598_s18, %s1930_s18   ;;  %s1518_s17 = sphi %s1596_s17, %s1929_s17  }
   0x4   : > { %s1621_s23 = sadd.s32 1, %s1530_s20   ;;  %s277_s24 = sadd.s32 1, %s1526_s19 }
   0x5   : > { %s274_s25 = ssub.s32 %s1530_s20, %s1621_s23  ;;  %p287_p0 = scmp.ne.s32.totalorder %s1526_s19, %s1522_s18 }
   0x6   : > { %p275_p1 = scmp.eq.s32.totalorder %s274_s25, 0  ;;  %p288_p2 = scmp.eq.s32.totalorder %s1617_s21, 1 }
   0x7   : > { %p293_p3 = scmp.ne.s32.totalorder %s1522_s18, %s1518_s17  ;;  %p294_p4 = scmp.eq.s32.totalorder %s1197_s22, 1 }
   0x8   : > { %s1632_s26 = scalar_select %p275_p1, %s1526_s19, %s277_s24  }
   0x9   : > { %p1634_p5 = por %p288_p2, %p287_p0  ;;  %p1638_p6 = por %p294_p4, %p293_p3 }
   0xa   : > { %1924 = sst [smem:[#allocation5_spill]] %s1632_s26  ;;  %p1200_p7 = scmp.ge.s32.totalorder %s1530_s20, 1 }
   0xb   : > { %p360_p8 = scmp.lt.s32.totalorder %s1530_s20, 3 }
   0xd   : > { %p361_p9 = pnand %p1200_p7, %p360_p8 }
   0xe   : > { %v1415_v0 = vld [vmem:[%s1914_s3] sm:$0xff] (!%p361_p9)   ;;  %v1532_v1 = vmov (!%p361_p9), 0.0   ;;  %v1416_v2 = vld [vmem:[%s1914_s3 + $0x8] sm:$0xff] (!%p361_p9)   ;;  %v1533_v3 = vmov (!%p361_p9), 0   ;;  %vm1534_vm0 = vmmov (!%p361_p9), 0   ;;  %p409_p10 = scmp.lt.s32.totalorder (!%p361_p9), %s1617_s21, 1 }
   0xf   : > { %364 = sbr.rel (%p361_p9) target bundleno = 540 (0x21c), region = 64  ;;  %1317 = vmatprep.subr.bf16.mxu1 (!%p361_p9), %v1532_v1  ;;  %776 = vmatprep.subr.bf16.mxu0 (!%p361_p9), %v1533_v3  ;;  %v1418_v4 = vld [vmem:[%s1918_s7] sm:$0xff] (!%p361_p9)   ;;  %v1420_v5 = vld [vmem:[%s1918_s7 + $0x8] sm:$0xff] (!%p361_p9)   ;;  %v1417_v6 = vld [vmem:[%s1914_s3 + $0x10] sm:$0xff] (!%p361_p9)   ;;  %vm487_vm1 = vcmask (!%p361_p9), 785408   ;;  %vm772_vm2 = vcmask (!%p361_p9), 261120  }
  0x10   : > { %1318 = vmatpush3.bf16.msra.mxu1 (!%p361_p9), %v1415_v0  ;;  %1329 = vmatprep.mubr.msk.bf16.mxu1 (!%p361_p9), %vm1534_vm0, %v1532_v1  ;;  %v1422_v7 = vld [vmem:[%s1918_s7 + $0x10] sm:$0xff] (!%p361_p9)   ;;  %v1419_v8 = vld [vmem:[%s1914_s3 + $0x18] sm:$0xff] (!%p361_p9)   ;;  %v1421_v10 = vld [vmem:[%s1914_s3 + $0x20] sm:$0xff] (!%p361_p9)   ;;  %vm534_vm3 = vcmask (!%p361_p9), 1045504   ;;  %vm819_vm4 = vcmask (!%p361_p9), 1043456   ;;  %vm665_vm5 = vcmask (!%p361_p9), 1044480  }
  0x11   : > { %1319 = vmatprep.subr.bf16.mxu1 (!%p361_p9), %v1532_v1  ;;  %777 = vmatpush1.bf16.msra.mxu0 (!%p361_p9), %v1418_v4  ;;  %v1424_v9 = vld [vmem:[%s1918_s7 + $0x18] sm:$0xff] (!%p361_p9)   ;;  %v1427_v11 = vld [vmem:[%s1918_s7 + $0x20] sm:$0xff] (!%p361_p9)   ;;  %v1423_v12 = vld [vmem:[%s1914_s3 + $0x28] sm:$0xff] (!%p361_p9)   ;;  %s407_s26 = sand.u32 (!%p361_p9), 1, %s1522_s18   ;;  %s1264_s15 = sshll.u32 (!%p361_p9), %s1617_s21, 4 }
  0x12   : > { %778 = vmatprep.subr.bf16.mxu0 (!%p361_p9), %v1533_v3  ;;  %v1429_v14 = vld [vmem:[%s1918_s7 + $0x28] sm:$0xff] (!%p361_p9)   ;;  %v1426_v15 = vld [vmem:[%s1916_s5] sm:$0xff] (!%p361_p9)   ;;  %v1431_v17 = vld [vmem:[%s1918_s7 + $0x30] sm:$0xff] (!%p361_p9)   ;;  %s1869_s12 = scalar_lea.hbm (!%p361_p9), %s1922_s11, %s1264_s15 }
  0x13   : > { %v1428_v16 = vld [vmem:[%s1916_s5 + $0x8] sm:$0xff] (!%p361_p9)   ;;  %v1433_v19 = vld [vmem:[%s1918_s7 + $0x38] sm:$0xff] (!%p361_p9)   ;;  %v1430_v20 = vld [vmem:[%s1916_s5 + $0x10] sm:$0xff] (!%p361_p9)  }
  0x14   : > { %1320 = vmatpush3.bf16.msra.mxu1 (!%p361_p9), %v1416_v2  ;;  %v1435_v21 = vld [vmem:[%s1918_s7 + $0x40] sm:$0xff] (!%p361_p9)   ;;  %v1432_v22 = vld [vmem:[%s1916_s5 + $0x18] sm:$0xff] (!%p361_p9)   ;;  %v1437_v23 = vld [vmem:[%s1918_s7 + $0x48] sm:$0xff] (!%p361_p9)  }
  0x15   : > { %1321 = vmatprep.subr.bf16.mxu1 (!%p361_p9), %v1532_v1  ;;  %779 = vmatpush1.bf16.msra.mxu0 (!%p361_p9), %v1420_v5  ;;  %v1434_v24 = vld [vmem:[%s1916_s5 + $0x20] sm:$0xff] (!%p361_p9)   ;;  %v1436_v26 = vld [vmem:[%s1916_s5 + $0x28] sm:$0xff] (!%p361_p9)   ;;  %v1438_v27 = vld [vmem:[%s1916_s5 + $0x30] sm:$0xff] (!%p361_p9)  }
  0x16   : > { %s1663_s24 = scalar_select %p409_p10, %s1617_s21, 1  ;;  %780 = vmatprep.subr.bf16.mxu0 %v1533_v3  ;;  %v1442_v28 = vld [vmem:[%s1916_s5 + $0x38] sm:$0xff]   ;;  %v1444_v30 = vld [vmem:[%s1920_s9 + $0x80] sm:$0xff]   ;;  %v1445_v32 = vld [vmem:[%s1920_s9 + $0x88] sm:$0xff]  }
  0x17   : > { %v1446_v31 = vld [vmem:[%s1920_s9 + $0x40] sm:$0xff]   ;;  %v1448_v34 = vld [vmem:[%s1920_s9 + $0x90] sm:$0xff]   ;;  %v1449_v35 = vld [vmem:[%s1920_s9 + $0x48] sm:$0xff]   ;;  %s1535_s21 = smov [#allocation2]  }
  0x18   : > { %s1923_s30 = sshll.u32 %s1663_s24, 3  ;;  %1322 = vmatpush3.bf16.msra.mxu1 %v1417_v6  ;;  %s1269_s25 = sshll.u32 %s1663_s24, 4  ;;  %v1447_v33 = vld [vmem:[%s1920_s9] sm:$0xff]   ;;  %v1450_v36 = vld [vmem:[%s1920_s9 + $0x8] sm:$0xff]   ;;  %v1451_v37 = vld [vmem:[%s1920_s9 + $0x98] sm:$0xff]  }
  0x19   : > { %s413_s16 = scalar_lea.vmem %s1911_s0, %s1923_s30  ;;  %1323 = vmatprep.subr.bf16.mxu1 %v1532_v1  ;;  %781 = vmatpush1.bf16.msra.mxu0 %v1422_v7  ;;  %s1711_s22 = scalar_lea.vmem %s1913_s2, %s1269_s25  ;;  %v1452_v38 = vld [vmem:[%s1920_s9 + $0x50] sm:$0xff]   ;;  %v1454_v40 = vld [vmem:[%s1920_s9 + $0xa0] sm:$0xff]   ;;  %v1455_v41 = vld [vmem:[%s1920_s9 + $0x58] sm:$0xff]  }
  0x1a   : > { %782 = vmatprep.subr.bf16.mxu0 %v1533_v3  ;;  %v1425_v13 = vld [vmem:[%s413_s16] sm:$0x7f]   ;;  %s1927_s13 = sshll.u32 %s1663_s24, 3  ;;  %v1453_v39 = vld [vmem:[%s1920_s9 + $0x10] sm:$0xff]   ;;  %v1456_v42 = vld [vmem:[%s1920_s9 + $0x18] sm:$0xff]   ;;  %s408_s16 = scalar_lea.vmem [#allocation2], %s407_s26 }
  0x1b   : > { %v1441_v18 = vld [vmem:[%s1711_s22 + $0x4] ss:$8 sps:$4 sm:$0x3f]   ;;  %s1726_s25 = scalar_lea.vmem %s1912_s1, %s1927_s13  ;;  %v1439_v25 = vld [vmem:[%s1711_s22] ss:$8 sps:$4 sm:$0x3f]  }
  0x1c   : > { %1324 = vmatpush3.bf16.msra.mxu1 %v1419_v8  ;;  %1239 = vmatprep.mubr.msk.bf16.mxu0 %vm772_vm2, %v1441_v18  ;;  %v1443_v29 = vld [vmem:[%s1726_s25] sm:$0x7f]   ;;  %v1457_v43 = vld [vmem:[%s1920_s9 + $0xa8] sm:$0xff]   ;;  %v1460_v46 = vld [vmem:[%s1920_s9 + $0xb0] sm:$0xff]   ;;  %s1118_s29 = sshll.u32 %s408_s16, 4  ;;  %s1106_s13 = scalar_lea.sflag [#allocation3], %s407_s26  ;;  %s1871_s29 = int_to_ptr.vmem [resolvable:$true] %s1118_s29 }
  0x1d   : > { %1325 = vmatprep.subr.bf16.mxu1 %v1532_v1  ;;  %783 = vmatpush1.bf16.msra.mxu0 %v1424_v9  ;;  %v1458_v44 = vld [vmem:[%s1920_s9 + $0x60] sm:$0xff]   ;;  %v1461_v47 = vld [vmem:[%s1920_s9 + $0x68] sm:$0xff]   ;;  %v1463_v49 = vld [vmem:[%s1920_s9 + $0xb8] sm:$0xff]   ;;  %s1468_s22 = scalar_lea.vmem %s1871_s29, 16  ;;  %s1472_s14 = sshll.u32 %s1535_s21, 4  ;;  %s1473_s14 = int_to_ptr.vmem [resolvable:$false] %s1472_s14 }
  0x1e   : > { %784 = vmatprep.subr.bf16.mxu0 %v1533_v3  ;;  %v1459_v45 = vld [vmem:[%s1920_s9 + $0x20] sm:$0xff]   ;;  %v1462_v48 = vld [vmem:[%s1920_s9 + $0x28] sm:$0xff]   ;;  %v1464_v50 = vld [vmem:[%s1920_s9 + $0x70] sm:$0xff]   ;;  %p1469_p11 = scmp.ne.s32.totalorder %s1871_s29, %s1468_s22  ;;  %s1474_s30 = scalar_lea.vmem %s1473_s14, 32 }
  0x1f   : > { %v1465_v51 = vld [vmem:[%s1920_s9 + $0x30] sm:$0xff]   ;;  %v1466_v52 = vld [vmem:[%s1920_s9 + $0x78] sm:$0xff]   ;;  %v1207_v54 = vld [vmem:[%s1915_s4] ss:$0 sm:$0xff]  ;;  %p1475_p0 = scmp.lt.s32.totalorder %s1871_s29, %s1473_s14  ;;  %p1476_p1 = scmp.lt.s32.totalorder %s1474_s30, %s1468_s22 }
  0x20   : > { %1326 = vmatpush3.bf16.msra.mxu1 %v1421_v10  ;;  %v1467_v53 = vld [vmem:[%s1920_s9 + $0x38] sm:$0xff]   ;;  %p1470_p12 = pnand %p1469_p11, %p1634_p5 }
  0x21   : > { %1327 = vmatprep.subr.bf16.mxu1 %v1532_v1  ;;  %785 = vmatpush1.bf16.msra.mxu0 %v1427_v11  ;;  %p1477_p2 = por %p1476_p1, %p1475_p0 }
  0x22   : > { %786 = vmatprep.subr.bf16.mxu0 %v1533_v3  ;;  %p1471_p13 = pneg %p1470_p12 }
  0x24   : > { %1328 = vmatpush3.bf16.msra.mxu1 %v1423_v12  ;;  %p1478_p3 = pnand %p1477_p2, %p1471_p13 }
  0x25   : > { %1333 = vmatprep.subr.bf16.mxu1 %v1532_v1  ;;  %787 = vmatpush1.bf16.msra.mxu0 %v1429_v14 }
  0x26   : > { %788 = vmatprep.subr.bf16.mxu0 %v1533_v3 }
  0x27   : > { %1330 = vmatmul.mubr.msk.bf16.vlgmr.msra.gmra.mrb[0].mxu1 %vm487_vm1, %v1425_v13 }
  0x28   : > { %1334 = vmatpush3.bf16.msra.mxu1 %v1426_v15  ;;  %1349 = vmatprep.mubr.msk.bf16.mxu1 %vm1534_vm0, %v1532_v1  ;;  %v1216_v15 = vld [vmem:[%s1917_s6] ss:$0 sm:$0xff] }
  0x29   : > { %1335 = vmatprep.subr.bf16.mxu1 %v1532_v1  ;;  %789 = vmatpush1.bf16.msra.mxu0 %v1431_v17 }
  0x2a   : > { %790 = vmatprep.subr.bf16.mxu0 %v1533_v3 }
  0x2c   : > { %1336 = vmatpush3.bf16.msra.mxu1 %v1428_v16 }
  0x2d   : > { %1337 = vmatprep.subr.bf16.mxu1 %v1532_v1  ;;  %791 = vmatpush1.bf16.msra.mxu0 %v1433_v19 }
  0x2e   : > { %792 = vmatprep.subr.bf16.mxu0 %v1533_v3 }
  0x30   : > { %1338 = vmatpush3.bf16.msra.mxu1 %v1430_v20 }
  0x31   : > { %1339 = vmatprep.subr.bf16.mxu1 %v1532_v1  ;;  %793 = vmatpush1.bf16.msra.mxu0 %v1435_v21 }
  0x32   : > { %794 = vmatprep.subr.bf16.mxu0 %v1533_v3 }
  0x34   : > { %1340 = vmatpush3.bf16.msra.mxu1 %v1432_v22 }
  0x35   : > { %1341 = vmatprep.subr.bf16.mxu1 %v1532_v1  ;;  %795 = vmatpush1.bf16.msra.mxu0 %v1437_v23 }
  0x36   : > { %1353 = vmatprep.subr.bf16.mxu0 %v1532_v1 }
  0x38   : > { %1342 = vmatpush3.bf16.msra.mxu1 %v1434_v24  ;;  %809 = vmatmul.mubr.bf16.vlgmr.msra.gmra.mrb[0].mxu0 %v1439_v25 }
  0x39   : > { %1343 = vmatprep.subr.bf16.mxu1 %v1532_v1  ;;  %1369 = vmatprep.mubr.msk.bf16.mxu0 %vm1534_vm0, %v1532_v1 }
  0x3a   : > { %1354 = vmatpush3.bf16.msra.mxu0 %v1444_v30 }
  0x3b   : > { %1355 = vmatprep.subr.bf16.mxu0 %v1532_v1 }
  0x3c   : > { %1344 = vmatpush3.bf16.msra.mxu1 %v1436_v26 }
  0x3d   : > { %1345 = vmatprep.subr.bf16.mxu1 %v1532_v1 }
  0x3e   : > { %1356 = vmatpush3.bf16.msra.mxu0 %v1445_v32 }
  0x3f   : > { %1357 = vmatprep.subr.bf16.mxu0 %v1532_v1 }
  0x40   : > { %1346 = vmatpush3.bf16.msra.mxu1 %v1438_v27 }
  0x41   : > { %1347 = vmatprep.subr.bf16.mxu1 %v1532_v1 }
  0x42   : > { %1358 = vmatpush3.bf16.msra.mxu0 %v1448_v34 }
  0x43   : > { %1359 = vmatprep.subr.bf16.mxu0 %v1532_v1 }
  0x44   : > { %1348 = vmatpush3.bf16.msra.mxu1 %v1442_v28 }
  0x45   : > { %1286 = vmatprep.subr.bf16.mxu1 %v1446_v31 }
  0x46   : > { %1360 = vmatpush3.bf16.msra.mxu0 %v1451_v37 }
  0x47   : > { %1350 = vmatmul.mubr.bf16.vlgmr.msra.gmra.mrb[4].mxu1 %v1443_v29  ;;  %1361 = vmatprep.subr.bf16.mxu0 %v1532_v1 }
  0x48   : > { %1287 = vmatpush3.bf16.msra.mxu1 %v1447_v33 }
  0x49   : > { %1288 = vmatprep.subr.bf16.mxu1 %v1449_v35 }
  0x4a   : > { %1362 = vmatpush3.bf16.msra.mxu0 %v1454_v40 }
  0x4b   : > { %1363 = vmatprep.subr.bf16.mxu0 %v1532_v1 }
  0x4c   : > { %1289 = vmatpush3.bf16.msra.mxu1 %v1450_v36 }
  0x4d   : > { %1290 = vmatprep.subr.bf16.mxu1 %v1452_v38 }
  0x4e   : > { %1364 = vmatpush3.bf16.msra.mxu0 %v1457_v43 }
  0x4f   : > { %1365 = vmatprep.subr.bf16.mxu0 %v1532_v1 }
  0x50   : > { %1291 = vmatpush3.bf16.msra.mxu1 %v1453_v39 }
  0x51   : > { %1292 = vmatprep.subr.bf16.mxu1 %v1455_v41 }
  0x52   : > { %1366 = vmatpush3.bf16.msra.mxu0 %v1460_v46 }
  0x53   : > { %1367 = vmatprep.subr.bf16.mxu0 %v1532_v1  ;;  %v1226_v1 = vld [vmem:[%s1919_s8] ss:$0 sm:$0xff] }
  0x54   : > { %1293 = vmatpush3.bf16.msra.mxu1 %v1456_v42 }
  0x55   : > { %1294 = vmatprep.subr.bf16.mxu1 %v1458_v44 }
  0x56   : > { %1368 = vmatpush3.bf16.msra.mxu0 %v1463_v49  ;;  %v879_v49 = vld [vmem:[%s1921_s10] sm:$0x1] }
  0x58   : > { %1295 = vmatpush3.bf16.msra.mxu1 %v1459_v45 }
  0x59   : > { %1296 = vmatprep.subr.bf16.mxu1 %v1461_v47 }
  0x5c   : > { %1297 = vmatpush3.bf16.msra.mxu1 %v1462_v48 }
  0x5d   : > { %1298 = vmatprep.subr.bf16.mxu1 %v1464_v50 }
  0x60   : > { %1299 = vmatpush3.bf16.msra.mxu1 %v1465_v51 }
  0x61   : > { %1300 = vmatprep.subr.bf16.mxu1 %v1466_v52 }
  0x64   : > { %1301 = vmatpush3.bf16.msra.mxu1 %v1467_v53 }
  0xfa   : > { %v525_v55 = vpop.f32.mrb[0].mxu1 }
  0xfb   : > { %v1331_v56 = vpop.f32.mrb[1].mxu1  ;;  %v526_v57 = vadd.f32 %v1207_v54, %v525_v55 }
  0xfc   : > { %v528_v58 = vpop.f32.mrb[2].mxu1 }
  0xfd   : > { %v529_v59 = vadd.f32 %v1207_v54, %v528_v58  ;;  %v1332_v60 = vpop.f32.mrb[3].mxu1  ;;  %v532_v62 = vmax.f32 %v526_v57, 0.0 }
  0xff   : > { %v533_v61 = vmax.f32 %v529_v59, 0.0 }
 0x101   : > { %v535_v63 = vsel %vm534_vm3, %v533_v61, -inf }
 0x102   : > { %v536_v0 = vmax.f32 %v532_v62, %v535_v63 }
 0x104   : > { %v537_v13 = vrot.slane %v536_v0, 4 }
 0x106   : > { %v538_v21 = vmax.f32 %v536_v0, %v537_v13 }
 0x108   : > { %v539_v28 = vrot.slane %v538_v21, 2 }
 0x10a   : > { %v540_v34 = vmax.f32 %v538_v21, %v539_v28 }
 0x10b   : > { %v810_v2 = vpop.f32.mrb[0].mxu0 }
 0x10c   : > { %v811_v3 = vadd.f32 %v1226_v1, %v810_v2  ;;  %v812_v4 = vpop.f32.mrb[1].mxu0  ;;  %v541_v37 = vrot.slane %v540_v34, 1 }
 0x10d   : > { %v813_v5 = vpop.f32.mrb[2].mxu0 }
 0x10e   : > { %v814_v6 = vadd.f32 %v1226_v1, %v813_v5  ;;  %v815_v7 = vpop.f32.mrb[3].mxu0  ;;  %v817_v8 = vmax.f32 %v811_v3, 0.0  ;;  %v542_v40 = vmax.f32 %v540_v34, %v541_v37 }
 0x110   : > { %v818_v9 = vmax.f32 %v814_v6, 0.0  ;;  %v828_v43 = vpack.c.bf16 %v542_v40, %v542_v40 }
 0x112   : > { %v820_v10 = vsel %vm819_vm4, %v818_v9, -inf }
 0x113   : > { %v821_v11 = vmax.f32 %v817_v8, %v820_v10 }
 0x115   : > { %v822_v12 = vrot.slane %v821_v11, 4 }
 0x117   : > { %v823_v14 = vmax.f32 %v821_v11, %v822_v12 }
 0x119   : > { %v824_v17 = vrot.slane %v823_v14, 2 }
 0x11a   : > { %v656_v16 = vpop.f32.mrb[4].mxu1 }
 0x11b   : > { %v1351_v18 = vpop.f32.mrb[5].mxu1  ;;  %v657_v19 = vadd.f32 %v1216_v15, %v656_v16  ;;  %v825_v22 = vmax.f32 %v823_v14, %v824_v17 }
 0x11c   : > { %v659_v20 = vpop.f32.mrb[6].mxu1 }
 0x11d   : > { %v660_v23 = vadd.f32 %v1216_v15, %v659_v20  ;;  %v1352_v24 = vpop.f32.mrb[7].mxu1  ;;  %v826_v26 = vrot.slane %v825_v22, 1  ;;  %v663_v27 = vmax.f32 %v657_v19, 0.0 }
 0x11f   : > { %v664_v25 = vmax.f32 %v660_v23, 0.0  ;;  %v827_v30 = vmax.f32 %v825_v22, %v826_v26 }
 0x121   : > { %v666_v29 = vsel %vm665_vm5, %v664_v25, -inf  ;;  %v830_v32 = vpack.c.bf16 %v827_v30, %v827_v30 }
 0x122   : > { %v667_v31 = vmax.f32 %v663_v27, %v666_v29 }
 0x123   : > { %1370 = vmatmul.mubr.bf16.vlgmr.msra.gmra.mrb[4].mxu0 %v830_v32 }
 0x124   : > { %v668_v33 = vrot.slane %v667_v31, 4 }
 0x126   : > { %v669_v35 = vmax.f32 %v667_v31, %v668_v33 }
 0x128   : > { %v670_v36 = vrot.slane %v669_v35, 2 }
 0x12a   : > { %v671_v38 = vmax.f32 %v669_v35, %v670_v36 }
 0x12c   : > { %v672_v39 = vrot.slane %v671_v38, 1 }
 0x12e   : > { %v673_v41 = vmax.f32 %v671_v38, %v672_v39 }
 0x130   : > { %v829_v42 = vpack.c.bf16 %v673_v41, %v673_v41 }
 0x132   : > { %1056 = vmatprep.mubr.bf16.mxu1 %v829_v42 }
 0x133   : > { %1057 = vmatmul.mubr.bf16.vlgmr.msra.gmra.mrb[8].mxu1 %v828_v43 }
 0x1f6   : > { %v1098_v44 = vpop.f32.mrb[4].mxu0 }
 0x1f7   : > { %v1371_v45 = vpop.f32.mrb[5].mxu0 }
 0x1f8   : > { %v1101_v46 = vpop.f32.mrb[6].mxu0 }
 0x1f9   : > { %v1372_v47 = vpop.f32.mrb[7].mxu0 }
 0x206   : > { %v1302_v48 = vpop.f32.mrb[8].mxu1 }
 0x207   : > { %v1303_v50 = vpop.f32.mrb[9].mxu1 }
 0x208   : > { %v1304_v51 = vadd.f32 %v1303_v50, %v1302_v48  ;;  %v1305_v52 = vpop.f32.mrb[10].mxu1 }
 0x209   : > { %v1306_v53 = vpop.f32.mrb[11].mxu1 }
 0x20a   : > { %v1059_v54 = vadd.f32 %v1304_v51, %v879_v49 }
 0x20c   : > { %v1099_v55 = vadd.f32 %v1098_v44, %v1059_v54 }
 0x20e   : > { %1104 = vst [vmem:[%s408_s16] sm:$0x1] %v1099_v55 }
 0x20f   : > { %1481 = shalt.err (!%p1478_p3)
}
 0x210   : > { %s1482_s26 = scalar_lea.hbm %s1869_s12, 16  ;;  %s1486_s24 = scalar_lea.hbm %s1922_s11, 32 }
 0x211   : > { %p1483_p4 = scmp.ne.s32.totalorder %s1869_s12, %s1482_s26  ;;  %p1487_p9 = scmp.lt.u32.totalorder %s1869_s12, %s1922_s11 }
 0x212   : > { %p1488_p10 = scmp.lt.u32.totalorder %s1486_s24, %s1482_s26  ;;  %p1490_p12 = scmp.lt.u32.totalorder %s1482_s26, %s1869_s12 }
 0x213   : > { %p1484_p7 = pnand %p1483_p4, %p1634_p5 }
 0x214   : > { %p1489_p11 = por %p1488_p10, %p1487_p9 }
 0x215   : > { %p1485_p8 = pneg %p1484_p7 }
 0x216   : > { %p1491_p13 = por %p1490_p12, %p1489_p11 }
 0x218   : > { %p1492_p0 = pnand %p1491_p13, %p1485_p8 }
 0x21a   : > { %1495 = shalt.err (!%p1492_p0)
}
 0x21b   : > { %1373 = dma.vmem_to_hbm [thread:$0]  (%p1634_p5), %s1871_s29, 16, %s1869_s12, %s1106_s13  }
 0x21c PF: > { %p1379_p1 = scmp.ge.s32.totalorder %s1530_s20, 2  ;;  %s1130_s22 = sand.u32 1, %s1518_s17  }
 0x21d   : > { %s1131_s14 = scalar_lea.sflag [#allocation3], %s1130_s22 }
 0x21e   : > { %p1376_p2 = pnand %p1379_p1, %p1638_p6 }
 0x220   : > { %1513 = dma.done.wait (!%p1376_p2), %s1131_s14, 16  }
 0x221   : > { %1515 = vsyncadd (!%p1376_p2), %s1131_s14, 4294967280  ;;  %s1928_s30 = sld [smem:[#allocation5_spill]]  ;;  %p21_p3 = scmp.ge.s32.totalorder %s1621_s23, 4  }
 0x222   : > { %s1929_s17 = smov %s1522_s18  ;;  %s1930_s18 = smov %s1526_s19 }
 0x223   : > { %s1932_s20 = smov %s1621_s23  ;;  %23 = sbr.rel (!%p21_p3) target bundleno = 3 (0x3), region = 105 }
 0x227   : > { %s1931_s19 = smov %s1928_s30 }
 0x22a   :  { %1135 = vsyncpa [#allocation3], 1 }
 0x22b   :  { %1137 = vsyncpa [#allocation3 + $0x1], 1 }

</bundles_post_ra>
